<compile_context>
chip_gen: v7x
topology: tpu7x:2x2x1
jax: 0.10.0
libtpu: 0.0.40
codegen_flags: <defaults>
</compile_context>

<pallas_src>
import jax
import jax.numpy as jnp
from jax.experimental import pallas as pl
from jax.experimental.pallas import tpu as pltpu


# --------------------------------------------------------------------------- #
# Kernels
# --------------------------------------------------------------------------- #
def _matmul_bias_kernel(x_ref, w_ref, b_ref, o_ref):
    # x:(tm,K)  w:(K,N)  b:(1,N)  o:(tm,N)  -- single K block
    acc = jnp.dot(x_ref[...], w_ref[...], preferred_element_type=jnp.float32)
    o_ref[...] = (acc + b_ref[...]).astype(o_ref.dtype)


def _matmul_bias_acc_kernel(x_ref, w_ref, b_ref, o_ref, acc_ref):
    # x:(tm,tk)  w:(tk,N)  b:(1,N)  o:(tm,N)  acc:(tm,N) f32 -- K-split reduction
    @pl.when(pl.program_id(1) == 0)
    def _():
        acc_ref[...] = jnp.zeros_like(acc_ref)

    acc_ref[...] += jnp.dot(x_ref[...], w_ref[...],
                            preferred_element_type=jnp.float32)

    @pl.when(pl.program_id(1) == pl.num_programs(1) - 1)
    def _():
        o_ref[...] = (acc_ref[...] + b_ref[...]).astype(o_ref.dtype)


# --------------------------------------------------------------------------- #
# Tiling helpers
# --------------------------------------------------------------------------- #
_VMEM_LIMIT = 32 * 1024 * 1024          # explicit scoped-VMEM request (all gens)
_VMEM_BUDGET = 20 * 1024 * 1024         # what the tile picker targets


def _pick_tile_k(K, max_tk=2048):
    if K <= max_tk:
        return K
    start = max_tk - (max_tk % 128)
    for tk in range(start, 0, -128):
        if K % tk == 0:
            return tk
    # TODO(synk): very large K that is not a multiple of 128 would need masked
    # K tiles; fall back to a single (large) K block.
    return K


def _pick_tile_m(M, K, N, in_bytes, out_bytes, max_tile=1024, budget=_VMEM_BUDGET):
    # weight/bias blocks are index-constant but budget them double-buffered to be safe
    resident = 2 * K * N * in_bytes + 8 * N * out_bytes
    per_row = 2 * K * in_bytes + 2 * N * out_bytes + N * 4     # dbl-buffered x/out + f32 acc
    tm = (budget - resident) // per_row if budget > resident else 128
    tm = int(min(max_tile, max(128, tm)))
    tm -= tm % 8
    return M if M <= tm else tm


def _block_diag(Wg):
    """(G, cin, cout) -> block-diagonal (G*cin, G*cout)."""
    G, cin, cout = Wg.shape
    idx = jnp.arange(G)
    bd = jnp.zeros((G, cin, G, cout), Wg.dtype).at[idx, :, idx, :].set(Wg)
    return bd.reshape(G * cin, G * cout)


def _row_tiled_matmul_bias(x2d, w2d, b2d, out_dtype, tile_m=None, tile_k=None):
    """out = x2d @ w2d + b2d, row-tiled and (optionally) K-split."""
    M, K = x2d.shape
    N = w2d.shape[-1]
    in_bytes = jnp.dtype(x2d.dtype).itemsize
    out_bytes = jnp.dtype(out_dtype).itemsize

    tk = tile_k if tile_k is not None else _pick_tile_k(K)
    tm = tile_m if tile_m is not None else _pick_tile_m(M, tk, N, in_bytes, out_bytes)
    tm = M if M <= tm else tm

    grid_m = pl.cdiv(M, tm)
    grid_k = pl.cdiv(K, tk)

    if grid_k == 1:
        return pl.pallas_call(
            _matmul_bias_kernel,
            out_shape=jax.ShapeDtypeStruct((M, N), out_dtype),
            grid=(grid_m,),
            in_specs=[
                pl.BlockSpec((tm, K), lambda i: (i, 0)),
                pl.BlockSpec((K, N), lambda i: (0, 0)),   # resident across row tiles
                pl.BlockSpec((1, N), lambda i: (0, 0)),
            ],
            out_specs=pl.BlockSpec((tm, N), lambda i: (i, 0)),
            compiler_params=pltpu.CompilerParams(
                dimension_semantics=("parallel",),
                vmem_limit_bytes=_VMEM_LIMIT,
            ),
        )(x2d, w2d, b2d)

    # K-split path: tiles must evenly cover K (OOB K reads would corrupt the sum).
    assert K % tk == 0 and tk % 128 == 0, "K tiling requires tk | K and tk % 128 == 0"
    return pl.pallas_call(
        _matmul_bias_acc_kernel,
        out_shape=jax.ShapeDtypeStruct((M, N), out_dtype),
        grid=(grid_m, grid_k),
        in_specs=[
            pl.BlockSpec((tm, tk), lambda i, k: (i, k)),
            pl.BlockSpec((tk, N), lambda i, k: (k, 0)),
            pl.BlockSpec((1, N), lambda i, k: (0, 0)),
        ],
        out_specs=pl.BlockSpec((tm, N), lambda i, k: (i, 0)),
        scratch_shapes=[pltpu.VMEM((tm, N), jnp.float32)],
        compiler_params=pltpu.CompilerParams(
            dimension_semantics=("parallel", "arbitrary"),
            vmem_limit_bytes=_VMEM_LIMIT,
        ),
    )(x2d, w2d, b2d)


# --------------------------------------------------------------------------- #
# Module-level wrappers (channel-first forward)
# --------------------------------------------------------------------------- #
def conv1d1x1_dense(x, W, bias, compute_dtype=jnp.bfloat16, tile_m=None, tile_k=None):
    """groups == 1.  x:(B,C,cin), W:(cin,cout), bias:(1,cout)|None -> (B,C,cout)."""
    B, C, cin = x.shape
    cout = W.shape[-1]
    out_dtype = x.dtype
    M = B * C

    xc = x.reshape(M, cin).astype(compute_dtype)
    Wc = W.astype(compute_dtype)
    b2d = (jnp.zeros((1, cout), jnp.float32) if bias is None
           else bias.reshape(1, cout).astype(jnp.float32))

    # Lane-dense packing: fold P rows into one output row of width P*cout (>=128)
    # via a P-way replicated block-diagonal weight.  x/out reshapes are free
    # (row-major contiguous), and the output switches to unmasked vector stores.
    P = 1
    if cout < 128 and 128 % cout == 0:
        P = 128 // cout
        if M % P != 0 or cin * P > 1024:
            P = 1
    if P > 1:
        Wc = _block_diag(jnp.broadcast_to(Wc, (P, cin, cout)))   # (P*cin, P*cout)
        b2d = jnp.tile(b2d, (1, P))
        xc = xc.reshape(M // P, P * cin)

    out = _row_tiled_matmul_bias(xc, Wc, b2d, out_dtype, tile_m=tile_m, tile_k=tile_k)
    return out.reshape(B, C, cout)


def conv1d1x1_grouped(x, W, bias, compute_dtype=jnp.bfloat16, tile_m=None, tile_k=None):
    """groups > 1.  x:(B,G,cin), W:(G,cin,cout), bias:(G,cout)|None -> (B,G,cout)."""
    B, G, cin = x.shape
    cout = W.shape[-1]
    out_dtype = x.dtype

    Wc = W.astype(compute_dtype)
    b = (jnp.zeros((G, cout), jnp.float32) if bias is None
         else bias.astype(jnp.float32))

    bd_bytes = (G * cin) * (G * cout) * jnp.dtype(compute_dtype).itemsize
    if bd_bytes <= 8 * 1024 * 1024:
        # Fold all groups into one block-diagonal matmul: no wrapper transposes,
        # no per-group grid steps, lane-dense output when G*cout >= 128.
        Wbd = _block_diag(Wc)                                   # (G*cin, G*cout)
        xf = x.reshape(B, G * cin).astype(compute_dtype)
        bf = b.reshape(1, G * cout)
        out = _row_tiled_matmul_bias(xf, Wbd, bf, out_dtype, tile_m=tile_m, tile_k=tile_k)
        return out.reshape(B, G, cout)

    # Fallback for very large per-group weights: group-major grid.
    # TODO(synk): this path still pays two wrapper HBM transposes; replace with a
    # custom DMA layout if it ever becomes hot.
    xg = jnp.transpose(x, (1, 0, 2)).astype(compute_dtype)      # (G, B, cin)
    bg = b.reshape(G, 1, cout)
    tm = B if B <= 512 else 512
    out = pl.pallas_call(
        _matmul_bias_kernel,
        out_shape=jax.ShapeDtypeStruct((G, B, cout), out_dtype),
        grid=(G, pl.cdiv(B, tm)),
        in_specs=[
            pl.BlockSpec((None, tm, cin), lambda g, i: (g, i, 0)),
            pl.BlockSpec((None, cin, cout), lambda g, i: (g, 0, 0)),
            pl.BlockSpec((None, 1, cout), lambda g, i: (g, 0, 0)),
        ],
        out_specs=pl.BlockSpec((None, tm, cout), lambda g, i: (g, i, 0)),
        compiler_params=pltpu.CompilerParams(
            dimension_semantics=("parallel", "parallel"),
            vmem_limit_bytes=_VMEM_LIMIT,
        ),
    )(xg, Wc, bg)
    return jnp.transpose(out, (1, 0, 2))


# --------------------------------------------------------------------------- #
# Self-test
# --------------------------------------------------------------------------- #
if __name__ == "__main__":
    key = jax.random.PRNGKey(0)
    k1, k2, k3, k4, k5, k6 = jax.random.split(key, 6)

    def bf(a):   # bf16-rounded f32, for references consistent with the bf16 path
        return a.astype(jnp.bfloat16).astype(jnp.float32)

    # ----- grouped case: B=2, G=4, cin=16, cout=32  (block-diag, G*cout=128) -----
    B, G, cin, cout = 2, 4, 16, 32
    xg = jax.random.normal(k1, (B, G, cin), dtype=jnp.float32)
    Wg = jax.random.normal(k2, (G, cin, cout), dtype=jnp.float32)
    bg = 0.1 * jax.random.normal(k3, (G, cout), dtype=jnp.float32)

    out_g = jax.block_until_ready(conv1d1x1_grouped(xg, Wg, bg))
    ref_g = jnp.einsum('bcm,cmn->bcn', bf(xg), bf(Wg)) + bg
    assert out_g.shape == (B, G, cout)
    assert jnp.allclose(out_g, ref_g, atol=1e-3, rtol=1e-3)

    # ----- grouped, no bias -----
    out_gnb = jax.block_until_ready(conv1d1x1_grouped(xg, Wg, None))
    ref_gnb = jnp.einsum('bcm,cmn->bcn', bf(xg), bf(Wg))
    assert jnp.allclose(out_gnb, ref_gnb, atol=1e-3, rtol=1e-3)

    # ----- groups == 1: B=2, C=4, cin=16, cout=32  (P=4 lane packing) -----
    C = 4
    xd = jax.random.normal(k4, (B, C, cin), dtype=jnp.float32)
    Wd = jax.random.normal(k5, (cin, cout), dtype=jnp.float32)
    bd = 0.1 * jax.random.normal(k6, (1, cout), dtype=jnp.float32)

    out_d = jax.block_until_ready(conv1d1x1_dense(xd, Wd, bd))
    ref_d = jnp.einsum('bcm,mn->bcn', bf(xd), bf(Wd)) + bd
    assert out_d.shape == (B, C, cout)
    assert jnp.allclose(out_d, ref_d, atol=1e-3, rtol=1e-3)

    # ----- f32 compute path: exact module semantics -----
    out_d32 = jax.block_until_ready(conv1d1x1_dense(xd, Wd, bd, compute_dtype=jnp.float32))
    ref_d32 = jnp.einsum('bcm,mn->bcn', xd, Wd) + bd
    assert jnp.allclose(out_d32, ref_d32, atol=1e-4, rtol=1e-4)

    # ----- multi-tile row grid with a partial last block -----
    Bl, Cl = 8, 640                      # M = 5120 rows -> 1280 packed rows, 3 tiles of 512
    xl = jax.random.normal(k1, (Bl, Cl, cin), dtype=jnp.float32)
    out_l = jax.block_until_ready(conv1d1x1_dense(xl, Wd, bd, tile_m=512))
    ref_l = jnp.einsum('bcm,mn->bcn', bf(xl), bf(Wd)) + bd
    assert jnp.allclose(out_l, ref_l, atol=1e-3, rtol=1e-3)

    # ----- K-split accumulator path: cin=64 -> packed K=256, forced tile_k=128 -----
    cinK = 64
    xk = jax.random.normal(k2, (2, 16, cinK), dtype=jnp.float32)
    Wk = jax.random.normal(k3, (cinK, cout), dtype=jnp.float32)
    out_k = jax.block_until_ready(conv1d1x1_dense(xk, Wk, bd, tile_k=128))
    ref_k = jnp.einsum('bcm,mn->bcn', bf(xk), bf(Wk)) + bd
    assert jnp.allclose(out_k, ref_k, atol=1e-3, rtol=1e-3)

    # ----- wide-output path (cout >= 128, no packing) -----
    coutW = 256
    Ww = jax.random.normal(k5, (cin, coutW), dtype=jnp.float32)
    bw = 0.1 * jax.random.normal(k6, (1, coutW), dtype=jnp.float32)
    out_w = jax.block_until_ready(conv1d1x1_dense(xd, Ww, bw))
    ref_w = jnp.einsum('bcm,mn->bcn', bf(xd), bf(Ww)) + bw
    assert jnp.allclose(out_w, ref_w, atol=1e-3, rtol=1e-3)

    print("KERNEL_OK")
</pallas_src>

<mosaic_0001>
module attributes {stable_mosaic.version = 11 : i64} {
  func.func @_matmul_bias_kernel(%arg0: i32, %arg1: memref<2x64xbf16, #tpu.memory_space<vmem>>, %arg2: memref<64x128xbf16, #tpu.memory_space<vmem>>, %arg3: memref<1x128xf32, #tpu.memory_space<vmem>>, %arg4: memref<2x128xf32, #tpu.memory_space<vmem>>) attributes {dimension_semantics = [#tpu.dimension_semantics<parallel>], iteration_bounds = array<i64: 1>, scalar_prefetch = 0 : i64, scratch_operands = 0 : i64, tpu.core_type = #tpu.core_type<tc>, window_params = [{transform_indices = @transform_0, window_bounds = array<i64: 2, 64>}, {pipeline_mode = #tpu.pipeline_mode<synchronous>, transform_indices = @transform_1, window_bounds = array<i64: 64, 128>}, {pipeline_mode = #tpu.pipeline_mode<synchronous>, transform_indices = @transform_2, window_bounds = array<i64: 1, 128>}, {transform_indices = @transform_3, window_bounds = array<i64: 2, 128>}]} {
    %c0 = arith.constant 0 : index
    %c0_0 = arith.constant 0 : index
    %0 = vector.load %arg1[%c0, %c0_0] : memref<2x64xbf16, #tpu.memory_space<vmem>>, vector<2x64xbf16>
    %c0_1 = arith.constant 0 : index
    %c0_2 = arith.constant 0 : index
    %1 = vector.load %arg2[%c0_1, %c0_2] : memref<64x128xbf16, #tpu.memory_space<vmem>>, vector<64x128xbf16>
    %cst = arith.constant dense<0.000000e+00> : vector<2x128xf32>
    %2 = tpu.matmul %0, %1, %cst {dimension_numbers = #tpu.dot_dimension_numbers<[1], [0], [0], [1], [0, 0, 1, 1], [], []>} : vector<2x64xbf16>, vector<64x128xbf16>, vector<2x128xf32> -> vector<2x128xf32>
    %c0_3 = arith.constant 0 : index
    %c0_4 = arith.constant 0 : index
    %3 = vector.load %arg3[%c0_3, %c0_4] : memref<1x128xf32, #tpu.memory_space<vmem>>, vector<1x128xf32>
    %4 = vector.broadcast %3 : vector<1x128xf32> to vector<2x128xf32>
    %5 = arith.addf %2, %4 : vector<2x128xf32>
    %c0_5 = arith.constant 0 : index
    %c0_6 = arith.constant 0 : index
    %6 = vector.load %arg4[%c0_5, %c0_6] : memref<2x128xf32, #tpu.memory_space<vmem>>, vector<2x128xf32>
    tpu.vector_store %arg4[%c0_5, %c0_6], %5 {strides = array<i32>} : memref<2x128xf32, #tpu.memory_space<vmem>>, vector<2x128xf32>,
    return
  }
  func.func @transform_0(%arg0: i32) -> (i32, i32) {
    %c0_i32 = arith.constant 0 : i32
    %c0_i32_0 = arith.constant 0 : i32
    return %arg0, %c0_i32 : i32, i32
  }
  func.func @transform_1(%arg0: i32) -> (i32, i32) {
    %c0_i32 = arith.constant 0 : i32
    %c0_i32_0 = arith.constant 0 : i32
    %c0_i32_1 = arith.constant 0 : i32
    return %c0_i32, %c0_i32_0 : i32, i32
  }
  func.func @transform_2(%arg0: i32) -> (i32, i32) {
    %c0_i32 = arith.constant 0 : i32
    %c0_i32_0 = arith.constant 0 : i32
    %c0_i32_1 = arith.constant 0 : i32
    return %c0_i32, %c0_i32_0 : i32, i32
  }
  func.func @transform_3(%arg0: i32) -> (i32, i32) {
    %c0_i32 = arith.constant 0 : i32
    %c0_i32_0 = arith.constant 0 : i32
    return %arg0, %c0_i32 : i32, i32
  }
}

</mosaic_0001>

<bundles_post_ra>
// kernel: tpu_custom_call.1
= control target key start
LH: loop header
LB: loop body
LE: loop exit
PB: predicated region body
PF: predicated region fallthrough
CT: control target
= control target key end

     0   :  { %8 = vsyncpa [#allocation3], 0  ;;  %s322_s0 = inlined_call_operand.hbm [shape: bf16[2,64], index: 0, kind: input, shape index: {}]   ;;  %s323_s1 = inlined_call_operand.hbm [shape: bf16[64,128], index: 1, kind: input, shape index: {}]   ;;  %s324_s2 = inlined_call_operand.vmem [shape: f32[1,128], index: 2, kind: input, shape index: {}]   ;;  %s325_s3 = inlined_call_operand.hbm [shape: f32[2,128], index: 3, kind: output, shape index: {}]  }
   0x1   :  { %9 = vsyncpa [#allocation6], 0 }
   0x2   :  { %10 = vsyncpa [#allocation4], 0  ;;  %s249_s12 = smov [#allocation2]   ;;  %s250_s14 = smov [#allocation5]  }
   0x3   :  { %s17_s13 = sshll.u32 %s249_s12, 4  ;;  %s26_s15 = sshll.u32 %s250_s14, 4  ;;  %s18_s13 = int_to_ptr.vmem [resolvable:$true] %s17_s13  ;;  %s276_s15 = int_to_ptr.vmem [resolvable:$true] %s26_s15 }
   0x4   :  { %s177_s18 = scalar_lea.hbm %s322_s0, 16 }
   0x5   :  { %p178_p0 = scmp.ne.s32.totalorder %s322_s0, %s177_s18  ;;  %p181_p1 = scmp.lt.u32.totalorder %s177_s18, %s322_s0 }
   0x7   :  { %p183_p2 = pnand %p181_p1, %p178_p0 }
   0x9   :  { %186 = shalt.err (!%p183_p2)
}
   0xa   :  { %s187_s23 = scalar_lea.vmem %s18_s13, 16  ;;  %s191_s24 = scalar_lea.vmem %s18_s13, 32 }
   0xb   :  { %p188_p3 = scmp.ne.s32.totalorder %s18_s13, %s187_s23  ;;  %p192_p4 = scmp.lt.s32.totalorder %s18_s13, %s18_s13 }
   0xc   :  { %p193_p5 = scmp.lt.s32.totalorder %s191_s24, %s187_s23 }
   0xe   :  { %p194_p6 = por %p193_p5, %p192_p4 }
  0x10   :  { %p195_p7 = pnand %p194_p6, %p188_p3 }
  0x12   :  { %198 = shalt.err (!%p195_p7)
}
  0x13   :  { %20 = dma.hbm_to_vmem [thread:$0]  %s322_s0, 16, %s18_s13, [#allocation3]  }
  0x14   :  { %s199_s29 = scalar_lea.hbm %s323_s1, 512 }
  0x15   :  { %p200_p8 = scmp.ne.s32.totalorder %s323_s1, %s199_s29  ;;  %p203_p9 = scmp.lt.u32.totalorder %s199_s29, %s323_s1 }
  0x17   :  { %p205_p10 = pnand %p203_p9, %p200_p8 }
  0x19   :  { %208 = shalt.err (!%p205_p10)
}
  0x1a   :  { %s209_s7 = scalar_lea.vmem %s276_s15, 512  ;;  %p214_p12 = scmp.lt.s32.totalorder %s276_s15, %s276_s15 }
  0x1b   :  { %p210_p11 = scmp.ne.s32.totalorder %s276_s15, %s209_s7  ;;  %p215_p13 = scmp.lt.s32.totalorder %s209_s7, %s209_s7 }
  0x1d   :  { %p216_p0 = por %p215_p13, %p214_p12 }
  0x1f   :  { %p217_p1 = pnand %p216_p0, %p210_p11 }
  0x21   :  { %220 = shalt.err (!%p217_p1)
}
  0x22   :  { %s251_s0 = smov 64   ;;  %s252_s8 = smov 4  }
  0x23   :  { %32 = dma.hbm_to_vmem [thread:$0]  %s323_s1, 512, %s276_s15, [#allocation6], %s251_s0, %s251_s0, %s252_s8  }
  0x24   :  { %243 = dma.done.wait [#allocation3], 16  }
  0x25   :  { %244 = vsyncadd [#allocation3], 4294967280 }
  0x26   :  { %245 = dma.done.wait [#allocation6], 512  }
  0x27   :  { %246 = vsyncadd [#allocation6], 4294966784  ;;  %v253_v0 = vmov 0.0   ;;  %vm254_vm0 = vmmov 0   ;;  %v173_v1 = vld [vmem:[#allocation5] sm:$0xff]   ;;  %v174_v2 = vld [vmem:[#allocation5 + $0x8] sm:$0xff]  }
  0x28   :  { %154 = vmatprep.subr.bf16.mxu0 %v253_v0  ;;  %162 = vmatprep.mubr.msk.bf16.mxu0 %vm254_vm0, %v253_v0  ;;  %v175_v3 = vld [vmem:[#allocation5 + $0x10] sm:$0xff]   ;;  %v176_v4 = vld [vmem:[#allocation5 + $0x18] sm:$0xff]   ;;  %vm82_vm1 = vcmask 523264   ;;  %s255_s12 = smov [#allocation7]  }
  0x29   :  { %155 = vmatpush3.bf16.msra.mxu0 %v173_v1  ;;  %v42_v5 = vld [vmem:[#allocation2] sm:$0x1]  ;;  %s133_s13 = sshll.u32 %s255_s12, 4  ;;  %s134_s13 = int_to_ptr.vmem [resolvable:$true] %s133_s13 }
  0x2a   :  { %156 = vmatprep.subr.bf16.mxu0 %v253_v0  ;;  %v143_v6 = vld [vmem:[%s324_s2] ss:$0 sm:$0xff]  ;;  %s221_s14 = scalar_lea.vmem %s134_s13, 32  ;;  %p226_p3 = scmp.lt.s32.totalorder %s134_s13, %s134_s13 }
  0x2b   :  { %p222_p2 = scmp.ne.s32.totalorder %s134_s13, %s221_s14  ;;  %p227_p4 = scmp.lt.s32.totalorder %s221_s14, %s221_s14 }
  0x2d   :  { %157 = vmatpush3.bf16.msra.mxu0 %v174_v2  ;;  %p228_p5 = por %p227_p4, %p226_p3 }
  0x2e   :  { %158 = vmatprep.subr.bf16.mxu0 %v253_v0 }
  0x2f   :  { %p229_p6 = pnand %p228_p5, %p222_p2 }
  0x31   :  { %159 = vmatpush3.bf16.msra.mxu0 %v175_v3 }
  0x32   :  { %160 = vmatprep.subr.bf16.mxu0 %v253_v0 }
  0x35   :  { %161 = vmatpush3.bf16.msra.mxu0 %v176_v4 }
  0x38   :  { %163 = vmatmul.mubr.msk.bf16.vlgmr.msra.gmra.mrb[0].mxu0 %vm82_vm1, %v42_v5 }
 0x10b   :  { %v120_v7 = vpop.f32.mrb[0].mxu0 }
 0x10c   :  { %v121_v8 = vadd.f32 %v143_v6, %v120_v7  ;;  %v164_v9 = vpop.f32.mrb[1].mxu0 }
 0x10d   :  { %v123_v10 = vpop.f32.mrb[2].mxu0 }
 0x10e   :  { %126 = vst [vmem:[#allocation7] sm:$0x3] %v121_v8  ;;  %v165_v11 = vpop.f32.mrb[3].mxu0 }
 0x10f   :  { %232 = shalt.err (!%p229_p6)
}
 0x110   :  { %s233_s2 = scalar_lea.hbm %s325_s3, 32 }
 0x111   :  { %p234_p7 = scmp.ne.s32.totalorder %s325_s3, %s233_s2  ;;  %p237_p8 = scmp.lt.u32.totalorder %s233_s2, %s325_s3 }
 0x113   :  { %p239_p9 = pnand %p237_p8, %p234_p7 }
 0x115   :  { %242 = shalt.err (!%p239_p9)
}
 0x116   :  { %136 = dma.vmem_to_hbm [thread:$0]  %s134_s13, 32, %s325_s3, [#allocation4]  }
 0x117   :  { %247 = dma.done.wait [#allocation4], 32  }
 0x118   :  { %248 = vsyncadd [#allocation4], 4294967264 }
 0x119   :  { %140 = vsyncpa [#allocation3], 1 }
 0x11a   :  { %141 = vsyncpa [#allocation6], 1 }
 0x11b   :  { %142 = vsyncpa [#allocation4], 1 }

</bundles_post_ra>
